<compile_context>
chip_gen: v6e
topology: v6e:2x2x1
jax: 0.10.0
libtpu: 0.0.40
codegen_flags: <defaults>
</compile_context>

<pallas_src>
import jax
import jax.numpy as jnp
from jax.experimental import pallas as pl
from jax.experimental.pallas import tpu as pltpu

_LANES = 128
_SUBLANES = 8


def _round_up(a, m):
    return ((a + m - 1) // m) * m


def _cdiv(a, b):
    return -(-a // b)


def _vmem_limit_bytes():
    """Generation-aware VMEM cap: ~3/4 of physical, capped at 100 MiB, floor 32 MiB."""
    cap = 64 * 1024 * 1024  # conservative default (v7x per-TC physical)
    try:
        info = pltpu.get_tpu_info()
        cap = getattr(info, "vmem_capacity_bytes", None) or cap
    except Exception:
        pass
    return int(max(32 * 1024 * 1024, min(cap * 3 // 4, 100 * 1024 * 1024)))


def _make_kernel(compute_dtype):
    def kernel(x_ref, w_ref, b_ref, o_ref, acc_ref):
        # x_ref: (tn, tk)  w_ref: (tk, Cp)  b_ref: (1, Cp)  o_ref: (tn, C)  acc_ref: (tn, Cp) f32
        k = pl.program_id(1)

        @pl.when(k == 0)
        def _init():
            acc_ref[...] = jnp.zeros_like(acc_ref)

        x = x_ref[...]
        if x.dtype != compute_dtype:
            # in-kernel cast (e.g. f32 -> bf16): no extra host-side HBM pass over X
            x = x.astype(compute_dtype)
        acc_ref[...] += jnp.dot(x, w_ref[...], preferred_element_type=jnp.float32)

        @pl.when(k == pl.num_programs(1) - 1)
        def _finalize():
            # bias row carries -1e30 on padded class columns -> exp underflows to 0,
            # so padded classes never contribute to the softmax denominator.
            scores = acc_ref[...] + b_ref[...]
            m = jnp.max(scores, axis=1, keepdims=True)
            e = jnp.exp(scores - m)
            denom = jnp.sum(e, axis=1, keepdims=True)
            probs = e / denom  # exact divide: f32 path must hold tight tolerances
            o_ref[...] = probs[:, : o_ref.shape[1]].astype(o_ref.dtype)

    return kernel


def pt_logreg_forward(X, weights, b, *, block_n=1024, compute_dtype=jnp.float32):
    """X: (N, D), weights: (C, D), b: (C, 1) -> (N, C) softmax probabilities (f32).

    compute_dtype feeds the MXU (f32 or bf16); accumulation + softmax are always f32.
    """
    N, D = X.shape
    C = weights.shape[0]

    # ---- host-side layout plumbing (small parameter tensors only; X is never copied) ----
    Cp = _round_up(max(C, _LANES), _LANES)
    wt = jnp.zeros((D, Cp), dtype=compute_dtype).at[:, :C].set(weights.T.astype(compute_dtype))
    b_row = jnp.full((1, Cp), -1e30, dtype=jnp.float32)
    b_row = b_row.at[:, :C].set(b.reshape(1, C).astype(jnp.float32))

    # ---- batch tile ----
    tn = _round_up(min(block_n, _round_up(N, _SUBLANES)), _SUBLANES)
    if _cdiv(N, tn) == 1 and N > _SUBLANES:
        # split the batch so v7x's second TensorCore gets work
        tn = _round_up(_cdiv(N, 2), _SUBLANES)
    grid_n = _cdiv(N, tn)

    # ---- feature (K) tile: split D only when resident operands would overflow VMEM ----
    vmem_limit = _vmem_limit_bytes()
    budget = int(vmem_limit * 0.8)
    x_isize = jnp.dtype(X.dtype).itemsize
    w_isize = jnp.dtype(compute_dtype).itemsize

    def _usage(tk):
        return (2 * tn * tk * x_isize      # double-buffered X tile
                + 2 * tk * Cp * w_isize    # double-buffered W tile
                + 2 * Cp * 4               # bias row
                + 2 * tn * C * 4           # output tile
                + tn * Cp * 4)             # f32 accumulator scratch

    tk = D
    if _usage(D) > budget and D % _LANES == 0:
        chosen = None
        for mult in range(D // _LANES, 0, -1):
            cand = mult * _LANES
            if D % cand == 0:              # tk must divide D exactly (reduction axis)
                chosen = cand
                if _usage(cand) <= budget:
                    break
        tk = chosen if chosen is not None else D
    grid_k = D // tk

    kernel = _make_kernel(jnp.dtype(compute_dtype))

    out = pl.pallas_call(
        kernel,
        out_shape=jax.ShapeDtypeStruct((N, C), jnp.float32),
        grid=(grid_n, grid_k),
        in_specs=[
            # X tiles stream over (batch, feature) grid.
            pl.BlockSpec((tn, tk), lambda i, k: (i, k)),
            # W_t cycles over the feature axis only; bias is VMEM-resident.
            pl.BlockSpec((tk, Cp), lambda i, k: (k, 0)),
            pl.BlockSpec((1, Cp), lambda i, k: (0, 0)),
        ],
        # Un-padded output block: last dim == full array dim (legal), 128/C x fewer HBM writes.
        out_specs=pl.BlockSpec((tn, C), lambda i, k: (i, 0)),
        scratch_shapes=[pltpu.VMEM((tn, Cp), jnp.float32)],
        compiler_params=pltpu.CompilerParams(
            dimension_semantics=("parallel", "arbitrary"),
            vmem_limit_bytes=vmem_limit,
        ),
    )(X, wt, b_row)
    return out


if __name__ == "__main__":
    # Small shapes consistent with the module: N datapoints of dimension D, C classes.
    N, D, C = 8, 32, 8

    key = jax.random.PRNGKey(0)
    kx, kw = jax.random.split(key)

    X = jax.random.normal(kx, (N, D), dtype=jnp.float32)
    # Parameter init mirroring __init__: weights ~ randn(C, D), b = zeros(C, 1)
    weights = jax.random.normal(kw, (C, D), dtype=jnp.float32)
    b = jnp.zeros((C, 1), dtype=jnp.float32)

    # Pure-JAX reference (HIGHEST-precision matmul so the comparison is meaningful).
    ref = jax.nn.softmax(
        jnp.dot(X, weights.T, precision=jax.lax.Precision.HIGHEST) + b.T, axis=1)

    # f32 compute path.
    probs = jax.block_until_ready(pt_logreg_forward(X, weights, b, compute_dtype=jnp.float32))
    assert probs.shape == (N, C)
    assert jnp.allclose(probs, ref, atol=1e-4, rtol=1e-4)
    assert jnp.allclose(jnp.sum(probs, axis=1), 1.0, atol=1e-5)

    # bf16 MXU-input / f32-accumulation path (looser tolerance).
    probs_bf16 = jax.block_until_ready(
        pt_logreg_forward(X, weights, b, compute_dtype=jnp.bfloat16))
    assert probs_bf16.shape == (N, C)
    assert jnp.allclose(probs_bf16, ref, atol=5e-2)
    assert jnp.allclose(jnp.sum(probs_bf16, axis=1), 1.0, atol=1e-3)

    # Ragged batch (N not a multiple of the tile) to exercise the un-padded path.
    N2 = 13
    X2 = jax.random.normal(jax.random.PRNGKey(1), (N2, D), dtype=jnp.float32)
    ref2 = jax.nn.softmax(
        jnp.dot(X2, weights.T, precision=jax.lax.Precision.HIGHEST) + b.T, axis=1)
    probs2 = jax.block_until_ready(pt_logreg_forward(X2, weights, b))
    assert probs2.shape == (N2, C)
    assert jnp.allclose(probs2, ref2, atol=1e-4, rtol=1e-4)
    assert jnp.allclose(jnp.sum(probs2, axis=1), 1.0, atol=1e-5)

    print("KERNEL_OK")
</pallas_src>

<mosaic_0001>
module attributes {stable_mosaic.version = 11 : i64} {
  func.func @kernel(%arg0: i32, %arg1: i32, %arg2: memref<8x32xf32, #tpu.memory_space<vmem>>, %arg3: memref<32x128xf32, #tpu.memory_space<vmem>>, %arg4: memref<1x128xf32, #tpu.memory_space<vmem>>, %arg5: memref<8x8xf32, #tpu.memory_space<vmem>>, %arg6: memref<8x128xf32, #tpu.memory_space<vmem>>) attributes {dimension_semantics = [#tpu.dimension_semantics<parallel>, #tpu.dimension_semantics<arbitrary>], iteration_bounds = array<i64: 1, 1>, scalar_prefetch = 0 : i64, scratch_operands = 1 : i64, tpu.core_type = #tpu.core_type<tc>, window_params = [{transform_indices = @transform_0, window_bounds = array<i64: 8, 32>}, {transform_indices = @transform_1, window_bounds = array<i64: 32, 128>}, {pipeline_mode = #tpu.pipeline_mode<synchronous>, transform_indices = @transform_2, window_bounds = array<i64: 1, 128>}, {transform_indices = @transform_3, window_bounds = array<i64: 8, 8>}]} {
    %c0_i32 = arith.constant 0 : i32
    %0 = arith.cmpi eq, %arg1, %c0_i32 : i32
    %1 = arith.extui %0 : i1 to i32
    %c0_i32_0 = arith.constant 0 : i32
    %2 = arith.cmpi ne, %1, %c0_i32_0 : i32
    scf.if %2 {
      %cst_10 = arith.constant 0.000000e+00 : f32
      %12 = vector.broadcast %cst_10 : f32 to vector<8x128xf32>
      %c0_11 = arith.constant 0 : index
      %c0_12 = arith.constant 0 : index
      %13 = vector.load %arg6[%c0_11, %c0_12] : memref<8x128xf32, #tpu.memory_space<vmem>>, vector<8x128xf32>
      tpu.vector_store %arg6[%c0_11, %c0_12], %12 {strides = array<i32>} : memref<8x128xf32, #tpu.memory_space<vmem>>, vector<8x128xf32>,
    } else {
    }
    %c0 = arith.constant 0 : index
    %c0_1 = arith.constant 0 : index
    %3 = vector.load %arg2[%c0, %c0_1] : memref<8x32xf32, #tpu.memory_space<vmem>>, vector<8x32xf32>
    %c0_2 = arith.constant 0 : index
    %c0_3 = arith.constant 0 : index
    %4 = vector.load %arg6[%c0_2, %c0_3] : memref<8x128xf32, #tpu.memory_space<vmem>>, vector<8x128xf32>
    %c0_4 = arith.constant 0 : index
    %c0_5 = arith.constant 0 : index
    %5 = vector.load %arg3[%c0_4, %c0_5] : memref<32x128xf32, #tpu.memory_space<vmem>>, vector<32x128xf32>
    %cst = arith.constant dense<0.000000e+00> : vector<8x128xf32>
    %6 = tpu.matmul %3, %5, %cst {dimension_numbers = #tpu.dot_dimension_numbers<[1], [0], [0], [1], [0, 0, 1, 1], [], []>} : vector<8x32xf32>, vector<32x128xf32>, vector<8x128xf32> -> vector<8x128xf32>
    %7 = arith.addf %4, %6 : vector<8x128xf32>
    %c0_6 = arith.constant 0 : index
    %c0_7 = arith.constant 0 : index
    %8 = vector.load %arg6[%c0_6, %c0_7] : memref<8x128xf32, #tpu.memory_space<vmem>>, vector<8x128xf32>
    tpu.vector_store %arg6[%c0_6, %c0_7], %7 {strides = array<i32>} : memref<8x128xf32, #tpu.memory_space<vmem>>, vector<8x128xf32>,
    %c0_i32_8 = arith.constant 0 : i32
    %9 = arith.cmpi eq, %arg1, %c0_i32_8 : i32
    %10 = arith.extui %9 : i1 to i32
    %c0_i32_9 = arith.constant 0 : i32
    %11 = arith.cmpi ne, %10, %c0_i32_9 : i32
    scf.if %11 {
      %c0_10 = arith.constant 0 : index
      %c0_11 = arith.constant 0 : index
      %12 = vector.load %arg6[%c0_10, %c0_11] : memref<8x128xf32, #tpu.memory_space<vmem>>, vector<8x128xf32>
      %c0_12 = arith.constant 0 : index
      %c0_13 = arith.constant 0 : index
      %13 = vector.load %arg4[%c0_12, %c0_13] : memref<1x128xf32, #tpu.memory_space<vmem>>, vector<1x128xf32>
      %14 = vector.broadcast %13 : vector<1x128xf32> to vector<8x128xf32>
      %15 = arith.addf %12, %14 : vector<8x128xf32>
      %cst_14 = arith.constant dense<0xFF800000> : vector<8xf32>
      %16 = vector.multi_reduction <maximumf>, %15, %cst_14 [1] : vector<8x128xf32> to vector<8xf32>
      %17 = vector.shape_cast %16 : vector<8xf32> to vector<8x1xf32>
      %18 = vector.broadcast %17 : vector<8x1xf32> to vector<8x128xf32>
      %19 = arith.subf %15, %18 : vector<8x128xf32>
      %20 = math.exp %19 : vector<8x128xf32>
      %cst_15 = arith.constant dense<0.000000e+00> : vector<8xf32>
      %21 = vector.multi_reduction <add>, %20, %cst_15 [1] : vector<8x128xf32> to vector<8xf32>
      %22 = vector.shape_cast %21 : vector<8xf32> to vector<8x1xf32>
      %23 = vector.broadcast %22 : vector<8x1xf32> to vector<8x128xf32>
      %24 = arith.divf %20, %23 : vector<8x128xf32>
      %25 = vector.extract_strided_slice %24 {offsets = [0, 0], sizes = [8, 8], strides = [1, 1]} : vector<8x128xf32> to vector<8x8xf32>
      %c0_16 = arith.constant 0 : index
      %c0_17 = arith.constant 0 : index
      %26 = vector.load %arg5[%c0_16, %c0_17] : memref<8x8xf32, #tpu.memory_space<vmem>>, vector<8x8xf32>
      tpu.vector_store %arg5[%c0_16, %c0_17], %25 {strides = array<i32>} : memref<8x8xf32, #tpu.memory_space<vmem>>, vector<8x8xf32>,
    } else {
    }
    return
  }
  func.func @transform_0(%arg0: i32, %arg1: i32) -> (i32, i32) {
    %c0_i32 = arith.constant 0 : i32
    return %arg0, %arg1 : i32, i32
  }
  func.func @transform_1(%arg0: i32, %arg1: i32) -> (i32, i32) {
    %c0_i32 = arith.constant 0 : i32
    %c0_i32_0 = arith.constant 0 : i32
    return %arg1, %c0_i32 : i32, i32
  }
  func.func @transform_2(%arg0: i32, %arg1: i32) -> (i32, i32) {
    %c0_i32 = arith.constant 0 : i32
    %c0_i32_0 = arith.constant 0 : i32
    %c0_i32_1 = arith.constant 0 : i32
    return %c0_i32, %c0_i32_0 : i32, i32
  }
  func.func @transform_3(%arg0: i32, %arg1: i32) -> (i32, i32) {
    %c0_i32 = arith.constant 0 : i32
    %c0_i32_0 = arith.constant 0 : i32
    return %arg0, %c0_i32 : i32, i32
  }
}

</mosaic_0001>

<bundles_post_ra>
// kernel: tpu_custom_call.1
= control target key start
LH: loop header
LB: loop body
LE: loop exit
PB: predicated region body
PF: predicated region fallthrough
CT: control target
= control target key end

     0   :  { %8 = vsyncpa [#allocation4], 0  ;;  %s301_s0 = inlined_call_operand.hbm [shape: f32[8,32], index: 0, kind: input, shape index: {}]   ;;  %s302_s1 = inlined_call_operand.hbm [shape: f32[32,128], index: 1, kind: input, shape index: {}]   ;;  %s303_s2 = inlined_call_operand.vmem [shape: f32[1,128], index: 2, kind: input, shape index: {}]   ;;  %s304_s3 = inlined_call_operand.hbm [shape: f32[8,8], index: 3, kind: output, shape index: {}]  }
   0x1   :  { %9 = vsyncpa [#allocation7], 0 }
   0x2   :  { %10 = vsyncpa [#allocation5], 0  ;;  %s262_s12 = smov [#allocation3]   ;;  %s263_s14 = smov [#allocation6]  }
   0x3   :  { %s17_s13 = sshll.u32 %s262_s12, 4  ;;  %s26_s15 = sshll.u32 %s263_s14, 4  ;;  %s18_s13 = int_to_ptr.vmem [resolvable:$true] %s17_s13  ;;  %s27_s15 = int_to_ptr.vmem [resolvable:$true] %s26_s15 }
   0x4   :  { %s204_s16 = scalar_lea.vmem %s18_s13, 128  ;;  %p209_p1 = scmp.lt.s32.totalorder %s18_s13, %s18_s13 }
   0x5   :  { %p205_p0 = scmp.ne.s32.totalorder %s18_s13, %s204_s16  ;;  %p210_p2 = scmp.lt.s32.totalorder %s204_s16, %s204_s16 }
   0x7   :  { %p211_p3 = por %p210_p2, %p209_p1 }
   0x9   :  { %p212_p4 = pnand %p211_p3, %p205_p0 }
   0xb   :  { %215 = shalt.err (!%p212_p4)
}
   0xc   :  { %20 = dma.hbm_to_vmem [thread:$0]  %s301_s0, 128, %s18_s13, [#allocation4]  }
   0xd   :  { %s224_s19 = scalar_lea.vmem %s27_s15, 512  ;;  %p229_p6 = scmp.lt.s32.totalorder %s27_s15, %s27_s15 }
   0xe   :  { %p225_p5 = scmp.ne.s32.totalorder %s27_s15, %s224_s19  ;;  %p230_p7 = scmp.lt.s32.totalorder %s224_s19, %s224_s19 }
  0x10   :  { %p231_p8 = por %p230_p7, %p229_p6 }
  0x12   :  { %p232_p9 = pnand %p231_p8, %p225_p5 }
  0x14   :  { %235 = shalt.err (!%p232_p9)
}
  0x15   :  { %s264_s20 = smov 128   ;;  %s265_s21 = smov 8  }
  0x16   :  { %32 = dma.hbm_to_vmem [thread:$0]  %s302_s1, 512, %s27_s15, [#allocation7], %s264_s20, %s264_s20, %s265_s21  }
  0x17   :  { %256 = dma.done.wait [#allocation4], 128  }
  0x18   :  { %257 = vsyncadd [#allocation4], 4294967168 }
  0x19   :  { %258 = dma.done.wait [#allocation7], 512  }
  0x1a   :  { %259 = vsyncadd [#allocation7], 4294966784  ;;  %v266_v0 = vmov 0.0   ;;  %vm267_vm0 = vmmov 0   ;;  %v51_v1 = vld [vmem:[#allocation6 + $0x18] sm:$0xff]  ;;  %v50_v2 = vld [vmem:[#allocation6 + $0x10] sm:$0xff] }
  0x1b   :  { %174 = vmatprep.subr.mxu0 %v266_v0  ;;  %182 = vmatprep.mubr.msk.f32.mxu0 %vm267_vm0, %v266_v0  ;;  %v49_v3 = vld [vmem:[#allocation6 + $0x8] sm:$0xff]  ;;  %v48_v4 = vld [vmem:[#allocation6] sm:$0xff]  ;;  %v46_v5 = vld [vmem:[#allocation3] sm:$0xff]  ;;  %vm52_vm1 = vcmask 261120   ;;  %s268_s24 = smov [#allocation8]   ;;  %vm149_vm2 = vcmask 64512  }
  0x1c   :  { %175 = vmatpush3.msra.mxu0 %v51_v1  ;;  %v168_v6 = vld [vmem:[%s303_s2] ss:$0 sm:$0xff]  ;;  %s157_s25 = sshll.u32 %s268_s24, 4  ;;  %s158_s25 = int_to_ptr.vmem [resolvable:$true] %s157_s25 }
  0x1d   :  { %176 = vmatprep.subr.mxu0 %v266_v0  ;;  %s236_s2 = scalar_lea.vmem %s158_s25, 128  ;;  %p241_p11 = scmp.lt.s32.totalorder %s158_s25, %s158_s25 }
  0x1e   :  { %177 = vmatpush3.msra.mxu0 %v50_v2  ;;  %p237_p10 = scmp.ne.s32.totalorder %s158_s25, %s236_s2  ;;  %p242_p12 = scmp.lt.s32.totalorder %s236_s2, %s236_s2 }
  0x1f   :  { %178 = vmatprep.subr.mxu0 %v266_v0 }
  0x20   :  { %179 = vmatpush3.msra.mxu0 %v49_v3  ;;  %p243_p13 = por %p242_p12, %p241_p11 }
  0x21   :  { %180 = vmatprep.subr.mxu0 %v266_v0 }
  0x22   :  { %181 = vmatpush3.msra.mxu0 %v48_v4  ;;  %p244_p0 = pnand %p243_p13, %p237_p10 }
  0x23   :  { %183 = vmatmul.mubr.msk.f32.vlgmr.msra.gmra.mxu0 %vm52_vm1, %v46_v5 }
  0xe3   :  { %v122_v7 = vpop.f32.mrf.mxu0 }
  0xe4   :  { %v139_v8 = vadd.f32 %v168_v6, %v122_v7 }
  0xe5   :  { %v184_v9 = vpop.f32.mrf.mxu0 }
  0xe6   :  { %140 = vmax.xlane.f32.xlu0 %v139_v8 }
 0x16f   :  { %v141_v10 = vpop.xlane.xlu0 %140 }
 0x170   :  { %v142_v11 = vsub.f32 %v139_v8, %v141_v10 }
 0x172   :  { %v143_v12 = vmul.f32 1.442695, %v142_v11 }
 0x174   :  { %192 = vpow2.f32 %v143_v12 }
 0x181   :  { %v193_v13 = vpop.eup %192 }
 0x182   :  { %145 = vadd.xlane.f32.xlu0 %v193_v13 }
 0x20b   :  { %v146_v14 = vpop.xlane.xlu0 %145 }
 0x20c   :  { %194 = vrcp.f32 %v146_v14 }
 0x219   :  { %v195_v15 = vpop.eup %194 }
 0x21a   :  { %v148_v16 = vmul.f32 %v195_v15, %v193_v13 }
 0x21c   :  { %150 = vst.msk [vmem:[#allocation8] sm:$0xff] %vm149_vm2, %v148_v16 }
 0x21d   :  { %247 = shalt.err (!%p244_p0)
}
 0x21e   :  { %160 = dma.vmem_to_hbm [thread:$0]  %s158_s25, 128, %s304_s3, [#allocation5]  }
 0x21f   :  { %260 = dma.done.wait [#allocation5], 128  }
 0x220   :  { %261 = vsyncadd [#allocation5], 4294967168 }
 0x221   :  { %164 = vsyncpa [#allocation4], 1 }
 0x222   :  { %165 = vsyncpa [#allocation7], 1 }
 0x223   :  { %166 = vsyncpa [#allocation5], 1 }

</bundles_post_ra>
